<compile_context>
chip_gen: v7x
topology: tpu7x:2x2x1
jax: 0.10.0
libtpu: 0.0.40
codegen_flags: <defaults>
</compile_context>

<pallas_src>
import functools

import jax
import jax.numpy as jnp
from jax import lax
from jax.experimental import pallas as pl
from jax.experimental.pallas import tpu as pltpu


def _round_up(x: int, m: int) -> int:
    return ((x + m - 1) // m) * m


def _mlp_triu_kernel(x_ref, w1_ref, w2_ref, o_ref, *, tm: int, h_dim: int):
    row_start = pl.program_id(0) * tm

    # Rows i >= h_dim: triu zeroes every valid column of h, so out = sin(0) = 0.
    @pl.when(row_start >= h_dim)
    def _():
        o_ref[...] = jnp.zeros_like(o_ref)

    @pl.when(row_start < h_dim)
    def _():
        # fc1 on the MXU: bf16 operands (x pre-cast in wrapper), f32 accumulation.
        h = jnp.dot(x_ref[...], w1_ref[...], preferred_element_type=jnp.float32)
        # Fused ReLU + triu: keep (i, j) iff j >= global_row(i) and h > 0.
        n, hd = h.shape
        row = lax.broadcasted_iota(jnp.int32, (n, hd), 0) + row_start
        col = lax.broadcasted_iota(jnp.int32, (n, hd), 1)
        h = jnp.where((col >= row) & (h > 0.0), h, 0.0)
        # fc2 on the MXU: bf16 operands, f32 accumulation.
        out = jnp.dot(h.astype(jnp.bfloat16), w2_ref[...],
                      preferred_element_type=jnp.float32)
        # sin epilogue in f32, then cast to output dtype.
        o_ref[...] = jnp.sin(out).astype(o_ref.dtype)


def test_module_forward(x, w1, w2, *, tm=None):
    """x: [N, in_dim]; w1: [h_dim, in_dim]; w2: [out_dim, h_dim] (PyTorch layout)."""
    n, in_dim = x.shape
    h_dim = w1.shape[0]
    out_dim = w2.shape[0]
    out_dtype = x.dtype

    # Pad all lane dims up to multiples of 128 for lane-dense loads/stores.
    in_p = _round_up(in_dim, 128)
    h_p = _round_up(h_dim, 128)
    out_p = _round_up(out_dim, 128)

    # Row tile: big enough to amortize per-step overhead, bounded so the f32
    # [TM, h_p] intermediate (+ double-buffered x/out tiles and the resident
    # bf16 weights) stays well inside v7x's 64 MiB VMEM.
    if tm is None:
        budget_rows = max(8, (4 * 1024 * 1024) // (4 * h_p))   # ~4 MiB intermediate
        tm = min(512, budget_rows, _round_up(n, 8))
        tm = max(8, (tm // 8) * 8)
    n_p = _round_up(n, tm)

    # Glue (outside the kernel): pad + transpose weights, pre-cast to bf16.
    w1t = jnp.zeros((in_p, h_p), jnp.bfloat16).at[:in_dim, :h_dim].set(
        w1.T.astype(jnp.bfloat16))
    w2t = jnp.zeros((h_p, out_p), jnp.bfloat16).at[:h_dim, :out_dim].set(
        w2.T.astype(jnp.bfloat16))
    # Pad + cast x in one step (halves the streamed x bytes into the kernel).
    x_p = jnp.zeros((n_p, in_p), jnp.bfloat16).at[:n, :in_dim].set(
        x.astype(jnp.bfloat16))

    kernel = functools.partial(_mlp_triu_kernel, tm=tm, h_dim=h_dim)

    flops = 2 * n_p * (in_p * h_p + h_p * out_p)
    bytes_accessed = (x_p.size * 2 + w1t.size * 2 + w2t.size * 2
                      + n_p * out_p * jnp.dtype(out_dtype).itemsize)

    out_padded = pl.pallas_call(
        kernel,
        out_shape=jax.ShapeDtypeStruct((n_p, out_p), out_dtype),
        grid_spec=pltpu.PrefetchScalarGridSpec(
            num_scalar_prefetch=0,
            grid=(n_p // tm,),
            in_specs=[
                pl.BlockSpec((tm, in_p), lambda i: (i, 0)),     # x: row tiles
                pl.BlockSpec((in_p, h_p), lambda i: (0, 0)),    # w1t: resident
                pl.BlockSpec((h_p, out_p), lambda i: (0, 0)),   # w2t: resident
            ],
            out_specs=pl.BlockSpec((tm, out_p), lambda i: (i, 0)),
        ),
        compiler_params=pltpu.CompilerParams(
            dimension_semantics=("parallel",),
            vmem_limit_bytes=64 * 1024 * 1024,
        ),
        cost_estimate=pl.CostEstimate(
            flops=flops,
            transcendentals=n_p * out_p,
            bytes_accessed=bytes_accessed,
        ),
    )(x_p, w1t, w2t)

    return out_padded[:n, :out_dim]


def _reference(x, w1, w2):
    h = x @ w1.T
    h = jnp.maximum(h, 0.0)
    h = jnp.triu(h)
    out = h @ w2.T
    return jnp.sin(out)


if __name__ == "__main__":
    # Small shapes consistent with the module: batch=8, in_dim=32, h_dim=32, out_dim=32
    N, IN_DIM, H_DIM, OUT_DIM = 8, 32, 32, 32

    key = jax.random.PRNGKey(0)
    kx, k1, k2 = jax.random.split(key, 3)

    x = jax.random.normal(kx, (N, IN_DIM), dtype=jnp.float32)
    # Deterministic "Kaiming-uniform-like" weight init (PyTorch Linear shapes).
    bound1 = 1.0 / (IN_DIM ** 0.5)
    bound2 = 1.0 / (H_DIM ** 0.5)
    w1 = jax.random.uniform(k1, (H_DIM, IN_DIM), jnp.float32, -bound1, bound1)
    w2 = jax.random.uniform(k2, (OUT_DIM, H_DIM), jnp.float32, -bound2, bound2)

    out = test_module_forward(x, w1, w2)
    out = jax.block_until_ready(out)

    ref = _reference(x, w1, w2)
    assert out.shape == (N, OUT_DIM)
    # bf16 MXU operands with f32 accumulation -> loosen the tolerance vs the f32 reference.
    assert jnp.allclose(out, ref, atol=2e-2, rtol=2e-2), float(jnp.max(jnp.abs(out - ref)))

    print("KERNEL_OK")
</pallas_src>

<mosaic_0001>
module attributes {stable_mosaic.version = 11 : i64} {
  func.func @_mlp_triu_kernel(%arg0: i32, %arg1: memref<8x128xbf16, #tpu.memory_space<vmem>>, %arg2: memref<128x128xbf16, #tpu.memory_space<vmem>>, %arg3: memref<128x128xbf16, #tpu.memory_space<vmem>>, %arg4: memref<8x128xf32, #tpu.memory_space<vmem>>) attributes {dimension_semantics = [#tpu.dimension_semantics<parallel>], iteration_bounds = array<i64: 1>, scalar_prefetch = 0 : i64, scratch_operands = 0 : i64, tpu.core_type = #tpu.core_type<tc>, window_params = [{transform_indices = @transform_0, window_bounds = array<i64: 8, 128>}, {pipeline_mode = #tpu.pipeline_mode<synchronous>, transform_indices = @transform_1, window_bounds = array<i64: 128, 128>}, {pipeline_mode = #tpu.pipeline_mode<synchronous>, transform_indices = @transform_2, window_bounds = array<i64: 128, 128>}, {transform_indices = @transform_3, window_bounds = array<i64: 8, 128>}]} {
    %c8_i32 = arith.constant 8 : i32
    %0 = arith.muli %arg0, %c8_i32 : i32
    %c32_i32 = arith.constant 32 : i32
    %1 = arith.cmpi sge, %0, %c32_i32 : i32
    %2 = arith.extui %1 : i1 to i32
    %c0_i32 = arith.constant 0 : i32
    %3 = arith.cmpi ne, %2, %c0_i32 : i32
    scf.if %3 {
      %cst = arith.constant 0.000000e+00 : f32
      %7 = vector.broadcast %cst : f32 to vector<8x128xf32>
      %c0 = arith.constant 0 : index
      %c0_2 = arith.constant 0 : index
      %8 = vector.load %arg4[%c0, %c0_2] : memref<8x128xf32, #tpu.memory_space<vmem>>, vector<8x128xf32>
      tpu.vector_store %arg4[%c0, %c0_2], %7 {strides = array<i32>} : memref<8x128xf32, #tpu.memory_space<vmem>>, vector<8x128xf32>,
    } else {
    }
    %c32_i32_0 = arith.constant 32 : i32
    %4 = arith.cmpi slt, %0, %c32_i32_0 : i32
    %5 = arith.extui %4 : i1 to i32
    %c0_i32_1 = arith.constant 0 : i32
    %6 = arith.cmpi ne, %5, %c0_i32_1 : i32
    scf.if %6 {
      %c0 = arith.constant 0 : index
      %c0_2 = arith.constant 0 : index
      %7 = vector.load %arg1[%c0, %c0_2] : memref<8x128xbf16, #tpu.memory_space<vmem>>, vector<8x128xbf16>
      %c0_3 = arith.constant 0 : index
      %c0_4 = arith.constant 0 : index
      %8 = vector.load %arg2[%c0_3, %c0_4] : memref<128x128xbf16, #tpu.memory_space<vmem>>, vector<128x128xbf16>
      %cst = arith.constant dense<0.000000e+00> : vector<8x128xf32>
      %9 = tpu.matmul %7, %8, %cst {dimension_numbers = #tpu.dot_dimension_numbers<[1], [0], [0], [1], [0, 0, 1, 1], [], []>} : vector<8x128xbf16>, vector<128x128xbf16>, vector<8x128xf32> -> vector<8x128xf32>
      %10 = tpu.iota {dimensions = array<i32: 0>} : vector<8x128xi32>
      %11 = vector.broadcast %0 : i32 to vector<8x128xi32>
      %12 = arith.addi %10, %11 : vector<8x128xi32>
      %13 = tpu.iota {dimensions = array<i32: 1>} : vector<8x128xi32>
      %14 = arith.cmpi sge, %13, %12 : vector<8x128xi32>
      %cst_5 = arith.constant 0.000000e+00 : f32
      %15 = vector.broadcast %cst_5 : f32 to vector<8x128xf32>
      %16 = arith.cmpf ogt, %9, %15 : vector<8x128xf32>
      %17 = arith.andi %14, %16 : vector<8x128xi1>
      %cst_6 = arith.constant 0.000000e+00 : f32
      %18 = vector.broadcast %cst_6 : f32 to vector<8x128xf32>
      %19 = arith.select %17, %9, %18 : vector<8x128xi1>, vector<8x128xf32>
      %20 = arith.truncf %19 : vector<8x128xf32> to vector<8x128xbf16>
      %c0_7 = arith.constant 0 : index
      %c0_8 = arith.constant 0 : index
      %21 = vector.load %arg3[%c0_7, %c0_8] : memref<128x128xbf16, #tpu.memory_space<vmem>>, vector<128x128xbf16>
      %cst_9 = arith.constant dense<0.000000e+00> : vector<8x128xf32>
      %22 = tpu.matmul %20, %21, %cst_9 {dimension_numbers = #tpu.dot_dimension_numbers<[1], [0], [0], [1], [0, 0, 1, 1], [], []>} : vector<8x128xbf16>, vector<128x128xbf16>, vector<8x128xf32> -> vector<8x128xf32>
      %23 = math.sin %22 : vector<8x128xf32>
      %c0_10 = arith.constant 0 : index
      %c0_11 = arith.constant 0 : index
      %24 = vector.load %arg4[%c0_10, %c0_11] : memref<8x128xf32, #tpu.memory_space<vmem>>, vector<8x128xf32>
      tpu.vector_store %arg4[%c0_10, %c0_11], %23 {strides = array<i32>} : memref<8x128xf32, #tpu.memory_space<vmem>>, vector<8x128xf32>,
    } else {
    }
    return
  }
  func.func @transform_0(%arg0: i32) -> (i32, i32) {
    %c0_i32 = arith.constant 0 : i32
    %c0_i32_0 = arith.constant 0 : i32
    return %arg0, %c0_i32 : i32, i32
  }
  func.func @transform_1(%arg0: i32) -> (i32, i32) {
    %c0_i32 = arith.constant 0 : i32
    %c0_i32_0 = arith.constant 0 : i32
    %c0_i32_1 = arith.constant 0 : i32
    return %c0_i32, %c0_i32_0 : i32, i32
  }
  func.func @transform_2(%arg0: i32) -> (i32, i32) {
    %c0_i32 = arith.constant 0 : i32
    %c0_i32_0 = arith.constant 0 : i32
    %c0_i32_1 = arith.constant 0 : i32
    return %c0_i32, %c0_i32_0 : i32, i32
  }
  func.func @transform_3(%arg0: i32) -> (i32, i32) {
    %c0_i32 = arith.constant 0 : i32
    %c0_i32_0 = arith.constant 0 : i32
    return %arg0, %c0_i32 : i32, i32
  }
}

</mosaic_0001>

<bundles_post_ra>
// kernel: tpu_custom_call.1
= control target key start
LH: loop header
LB: loop body
LE: loop exit
PB: predicated region body
PF: predicated region fallthrough
CT: control target
= control target key end

     0   :  { %8 = vsyncpa [#allocation3], 0  ;;  %s728_s0 = inlined_call_operand.hbm [shape: bf16[8,128], index: 0, kind: input, shape index: {}]   ;;  %s729_s1 = inlined_call_operand.hbm [shape: bf16[128,128], index: 1, kind: input, shape index: {}]   ;;  %s730_s2 = inlined_call_operand.hbm [shape: bf16[128,128], index: 2, kind: input, shape index: {}]   ;;  %s731_s3 = inlined_call_operand.hbm [shape: f32[8,128], index: 3, kind: output, shape index: {}]  }
   0x1   :  { %9 = vsyncpa [#allocation6], 0 }
   0x2   :  { %10 = vsyncpa [#allocation4], 0  ;;  %s619_s12 = smov [#allocation5]   ;;  %s525_s16 = scalar_lea.hbm %s729_s1, 1024 }
   0x3   :  { %s26_s13 = sshll.u32 %s619_s12, 4  ;;  %p526_p0 = scmp.ne.s32.totalorder %s729_s1, %s525_s16  ;;  %s27_s13 = int_to_ptr.vmem [resolvable:$true] %s26_s13 }
   0x4   :  { %p529_p1 = scmp.lt.u32.totalorder %s525_s16, %s729_s1 }
   0x6   :  { %p531_p2 = pnand %p529_p1, %p526_p0 }
   0x8   :  { %534 = shalt.err (!%p531_p2)
}
   0x9   :  { %s535_s21 = scalar_lea.vmem %s27_s13, 1024  ;;  %p540_p4 = scmp.lt.s32.totalorder %s27_s13, %s27_s13 }
   0xa   :  { %p536_p3 = scmp.ne.s32.totalorder %s27_s13, %s535_s21  ;;  %p541_p5 = scmp.lt.s32.totalorder %s535_s21, %s535_s21 }
   0xc   :  { %p542_p6 = por %p541_p5, %p540_p4 }
   0xe   :  { %p543_p7 = pnand %p542_p6, %p536_p3 }
  0x10   :  { %546 = shalt.err (!%p543_p7)
}
  0x11   :  { %s620_s22 = smov 64   ;;  %s621_s23 = smov 4  }
  0x12   :  { %32 = dma.hbm_to_vmem [thread:$0]  %s729_s1, 1024, %s27_s13, [#allocation6], %s620_s22, %s620_s22, %s621_s23  }
  0x13   :  { %s622_s26 = smov [#allocation2]   ;;  %s623_s28 = smov [#allocation7]  }
  0x14   :  { %s17_s27 = sshll.u32 %s622_s26, 4  ;;  %s38_s29 = sshll.u32 %s623_s28, 4  ;;  %s18_s27 = int_to_ptr.vmem [resolvable:$true] %s17_s27  ;;  %s39_s29 = int_to_ptr.vmem [resolvable:$true] %s38_s29 }
  0x15   :  { %s547_s5 = scalar_lea.hbm %s728_s0, 64 }
  0x16   :  { %p548_p8 = scmp.ne.s32.totalorder %s728_s0, %s547_s5  ;;  %p551_p9 = scmp.lt.u32.totalorder %s547_s5, %s728_s0 }
  0x18   :  { %p553_p10 = pnand %p551_p9, %p548_p8 }
  0x1a   :  { %556 = shalt.err (!%p553_p10)
}
  0x1b   :  { %s557_s1 = scalar_lea.vmem %s18_s27, 64  ;;  %p562_p12 = scmp.lt.s32.totalorder %s18_s27, %s18_s27 }
  0x1c   :  { %p558_p11 = scmp.ne.s32.totalorder %s18_s27, %s557_s1  ;;  %p563_p13 = scmp.lt.s32.totalorder %s557_s1, %s557_s1 }
  0x1e   :  { %p564_p0 = por %p563_p13, %p562_p12 }
  0x20   :  { %p565_p1 = pnand %p564_p0, %p558_p11 }
  0x22   :  { %568 = shalt.err (!%p565_p1)
}
  0x23   :  { %20 = dma.hbm_to_vmem [thread:$0]  %s728_s0, 64, %s18_s27, [#allocation3]  }
  0x24   :  { %s569_s14 = scalar_lea.hbm %s730_s2, 1024 }
  0x25   :  { %p570_p2 = scmp.ne.s32.totalorder %s730_s2, %s569_s14  ;;  %p573_p3 = scmp.lt.u32.totalorder %s569_s14, %s730_s2 }
  0x27   :  { %p575_p4 = pnand %p573_p3, %p570_p2 }
  0x29   :  { %578 = shalt.err (!%p575_p4)
}
  0x2a   :  { %s579_s19 = scalar_lea.vmem %s39_s29, 1024  ;;  %p584_p6 = scmp.lt.s32.totalorder %s39_s29, %s39_s29 }
  0x2b   :  { %p580_p5 = scmp.ne.s32.totalorder %s39_s29, %s579_s19  ;;  %p585_p7 = scmp.lt.s32.totalorder %s579_s19, %s579_s19 }
  0x2d   :  { %p586_p8 = por %p585_p7, %p584_p6 }
  0x2f   :  { %p587_p9 = pnand %p586_p8, %p580_p5 }
  0x31   :  { %590 = shalt.err (!%p587_p9)
}
  0x32   :  { %44 = dma.hbm_to_vmem [thread:$0]  %s730_s2, 1024, %s39_s29, [#allocation6], %s620_s22, %s620_s22, %s621_s23  }
  0x33   :  { %613 = dma.done.wait [#allocation3], 64  }
  0x34   :  { %614 = vsyncadd [#allocation3], 4294967232 }
  0x35   :  { %615 = dma.done.wait [#allocation6], 2048  }
  0x36   :  { %616 = vsyncadd [#allocation6], 4294965248  ;;  %v624_v0 = vmov 0.0   ;;  %vm625_vm0 = vmmov 0   ;;  %v505_v1 = vld [vmem:[#allocation5] sm:$0xff]   ;;  %v506_v2 = vld [vmem:[#allocation5 + $0x8] sm:$0xff]   ;;  %v170_v18 = vlaneseq }
  0x37   :  { %447 = vmatprep.subr.bf16.mxu0 %v624_v0  ;;  %463 = vmatprep.mubr.msk.bf16.mxu0 %vm625_vm0, %v624_v0  ;;  %v507_v3 = vld [vmem:[#allocation5 + $0x10] sm:$0xff]   ;;  %v513_v4 = vld [vmem:[#allocation7] sm:$0xff]   ;;  %v508_v5 = vld [vmem:[#allocation5 + $0x18] sm:$0xff]   ;;  %v626_v40 = vmov 683565275   ;;  %s632_s2 = smov [#allocation8]  }
  0x38   :  { %467 = vmatprep.subr.bf16.mxu1 %v624_v0  ;;  %483 = vmatprep.mubr.msk.bf16.mxu1 %vm625_vm0, %v624_v0  ;;  %v514_v6 = vld [vmem:[#allocation7 + $0x8] sm:$0xff]   ;;  %v509_v7 = vld [vmem:[#allocation5 + $0x20] sm:$0xff]   ;;  %v515_v8 = vld [vmem:[#allocation7 + $0x10] sm:$0xff]   ;;  %v171_v19 = vshrl.u32 %v170_v18, 7  ;;  %v175_v20 = vand.u32 127, %v170_v18  ;;  %s396_s21 = sshll.u32 %s632_s2, 4  ;;  %s397_s21 = int_to_ptr.vmem [resolvable:$true] %s396_s21 }
  0x39   :  { %448 = vmatpush3.bf16.msra.mxu0 %v505_v1  ;;  %468 = vmatpush3.bf16.msra.mxu1 %v513_v4  ;;  %v510_v9 = vld [vmem:[#allocation5 + $0x28] sm:$0xff]   ;;  %v516_v10 = vld [vmem:[#allocation7 + $0x18] sm:$0xff]   ;;  %v511_v11 = vld [vmem:[#allocation5 + $0x30] sm:$0xff]   ;;  %v627_v42 = vmov 2475754826   ;;  %s591_s22 = scalar_lea.vmem %s397_s21, 128  ;;  %p596_p11 = scmp.lt.s32.totalorder %s397_s21, %s397_s21 }
  0x3a   :  { %449 = vmatprep.subr.bf16.mxu0 %v624_v0  ;;  %469 = vmatprep.subr.bf16.mxu1 %v624_v0  ;;  %v517_v12 = vld [vmem:[#allocation7 + $0x20] sm:$0xff]   ;;  %v512_v13 = vld [vmem:[#allocation5 + $0x38] sm:$0xff]   ;;  %v518_v14 = vld [vmem:[#allocation7 + $0x28] sm:$0xff]   ;;  %vm176_vm1 = vcmp.ge.s32.totalorder %v175_v20, %v171_v19  ;;  %v628_v45 = vmov 2131351028   ;;  %p592_p10 = scmp.ne.s32.totalorder %s397_s21, %s591_s22  ;;  %p597_p12 = scmp.lt.s32.totalorder %s591_s22, %s591_s22 }
  0x3b   :  { %v65_v15 = vld [vmem:[#allocation2] sm:$0xf]  ;;  %v519_v16 = vld [vmem:[#allocation7 + $0x30] sm:$0xff]   ;;  %v629_v48 = vmov 2102212464  }
  0x3c   :  { %v520_v17 = vld [vmem:[#allocation7 + $0x38] sm:$0xff]   ;;  %v630_v51 = vmov 920167782   ;;  %v631_v54 = vmov 1326507024   ;;  %p598_p13 = por %p597_p12, %p596_p11 }
  0x3d   :  { %450 = vmatpush3.bf16.msra.mxu0 %v506_v2  ;;  %470 = vmatpush3.bf16.msra.mxu1 %v514_v6 }
  0x3e   :  { %451 = vmatprep.subr.bf16.mxu0 %v624_v0  ;;  %471 = vmatprep.subr.bf16.mxu1 %v624_v0  ;;  %p599_p0 = pnand %p598_p13, %p592_p10 }
  0x41   :  { %452 = vmatpush3.bf16.msra.mxu0 %v507_v3  ;;  %472 = vmatpush3.bf16.msra.mxu1 %v515_v8 }
  0x42   :  { %453 = vmatprep.subr.bf16.mxu0 %v624_v0  ;;  %473 = vmatprep.subr.bf16.mxu1 %v624_v0 }
  0x45   :  { %454 = vmatpush3.bf16.msra.mxu0 %v508_v5  ;;  %474 = vmatpush3.bf16.msra.mxu1 %v516_v10 }
  0x46   :  { %455 = vmatprep.subr.bf16.mxu0 %v624_v0  ;;  %475 = vmatprep.subr.bf16.mxu1 %v624_v0 }
  0x49   :  { %456 = vmatpush3.bf16.msra.mxu0 %v509_v7  ;;  %476 = vmatpush3.bf16.msra.mxu1 %v517_v12 }
  0x4a   :  { %457 = vmatprep.subr.bf16.mxu0 %v624_v0  ;;  %477 = vmatprep.subr.bf16.mxu1 %v624_v0 }
  0x4d   :  { %458 = vmatpush3.bf16.msra.mxu0 %v510_v9  ;;  %478 = vmatpush3.bf16.msra.mxu1 %v518_v14 }
  0x4e   :  { %459 = vmatprep.subr.bf16.mxu0 %v624_v0  ;;  %479 = vmatprep.subr.bf16.mxu1 %v624_v0 }
  0x51   :  { %460 = vmatpush3.bf16.msra.mxu0 %v511_v11  ;;  %480 = vmatpush3.bf16.msra.mxu1 %v519_v16 }
  0x52   :  { %461 = vmatprep.subr.bf16.mxu0 %v624_v0  ;;  %481 = vmatprep.subr.bf16.mxu1 %v624_v0 }
  0x55   :  { %462 = vmatpush3.bf16.msra.mxu0 %v512_v13  ;;  %482 = vmatpush3.bf16.msra.mxu1 %v520_v17 }
  0x58   :  { %464 = vmatmul.mubr.bf16.vlgmr.msra.gmra.mrb[0].mxu0 %v65_v15 }
 0x12b   :  { %v164_v21 = vpop.f32.mrb[0].mxu0 }
 0x12c   :  { %vm177_vm2 = vcmp.gt.f32.partialorder %v164_v21, 0.0  ;;  %v423_v22 = vpack.c.bf16 %v164_v21, %v164_v21  ;;  %v465_v23 = vpop.f32.mrb[1].mxu0 }
 0x12d   :  { %vm178_vm3 = vmand %vm176_vm1, %vm177_vm2  ;;  %v167_v24 = vpop.f32.mrb[2].mxu0 }
 0x12e   :  { %vm422_vm4 = vmpackc.low %vm178_vm3, %vm178_vm3  ;;  %v466_v25 = vpop.f32.mrb[3].mxu0 }
 0x12f   :  { %484 = vmatmul.mubr.msk.bf16.vlgmr.msra.gmra.mrb[0].mxu1 %vm422_vm4, %v423_v22 }
 0x202   :  { %v695_v26 = vpop.f32.mrb[0].mxu1 }
 0x203   :  { %v288_v27 = vand.u32 2139095040, %v695_v26  ;;  %v485_v28 = vpop.f32.mrb[1].mxu1  ;;  %v285_v34 = vand.u32 2147483647, %v695_v26  ;;  %vm287_vm12 = vcmp.lt.s32.totalorder %v695_v26, 0  ;;  %vm377_vm1 = vweird.f32 %v695_v26 }
 0x204   :  { %v282_v29 = vpop.f32.mrb[2].mxu1 }
 0x205   :  { %v289_v30 = vshrl.u32 %v288_v27, 23  ;;  %v486_v31 = vpop.f32.mrb[3].mxu1  ;;  %v292_v37 = vand.u32 8388607, %v285_v34  ;;  %vm286_vm13 = vcmp.le.f32.partialorder %v285_v34, 0.7853982 }
 0x207   :  { %v425_v32 = vadd.s32 4294967169, %v289_v30  ;;  %v293_v56 = vor.u32 8388608, %v292_v37 }
 0x209   :  { %v295_v33 = vadd.s32 1, %v425_v32  ;;  %v333_v6 = vshll.u32 %v293_v56, 8 }
 0x20b   :  { %vm296_vm5 = vcmp.gt.s32.totalorder %v295_v33, 0 }
 0x20c   :  { %v297_v35 = vsel %vm296_vm5, %v295_v33, 0 }
 0x20d   :  { %v299_v36 = vand.u32 31, %v297_v35  ;;  %v298_v39 = vshrl.u32 %v297_v35, 5 }
 0x20f   :  { %v300_v38 = vsub.s32 32, %v299_v36  ;;  %v302_v41 = vshll.u32 %v626_v40, %v299_v36  ;;  %v305_v43 = vshll.u32 %v627_v42, %v299_v36  ;;  %v308_v47 = vshll.u32 %v628_v45, %v299_v36 }
 0x210   :  { %v311_v50 = vshll.u32 %v629_v48, %v299_v36  ;;  %v314_v53 = vshll.u32 %v630_v51, %v299_v36  ;;  %vm317_vm6 = vcmp.lt.s32.totalorder %v298_v39, 1  ;;  %vm320_vm7 = vcmp.lt.s32.totalorder %v298_v39, 4 }
 0x211   :  { %v303_v44 = vshrl.u32 %v627_v42, %v300_v38  ;;  %v306_v46 = vshrl.u32 %v628_v45, %v300_v38  ;;  %v309_v49 = vshrl.u32 %v629_v48, %v300_v38  ;;  %v312_v52 = vshrl.u32 %v630_v51, %v300_v38 }
 0x212   :  { %v315_v55 = vshrl.u32 %v631_v54, %v300_v38  ;;  %v301_v1 = vshrl.u32 %v626_v40, %v300_v38  ;;  %vm319_vm8 = vcmp.lt.s32.totalorder %v298_v39, 3  ;;  %vm318_vm9 = vcmp.lt.s32.totalorder %v298_v39, 2 }
 0x213   :  { %v304_v57 = vor.u32 %v303_v44, %v302_v41  ;;  %v307_v58 = vor.u32 %v306_v46, %v305_v43  ;;  %v310_v59 = vor.u32 %v309_v49, %v308_v47  ;;  %v313_v60 = vor.u32 %v312_v52, %v311_v50 }
 0x214   :  { %v316_v61 = vor.u32 %v315_v55, %v314_v53 }
 0x215   :  { %v322_v62 = vsel %vm320_vm7, %v310_v59, 2102212464  ;;  %v325_v63 = vsel %vm317_vm6, %v304_v57, %v307_v58  ;;  %v329_v0 = vsel %vm317_vm6, %v307_v58, %v310_v59  ;;  %v326_v2 = vsel %vm320_vm7, %v313_v60, 920167782 }
 0x216   :  { %v330_v3 = vsel %vm320_vm7, %v316_v61, 1326507024  ;;  %v327_v4 = vsel %vm319_vm8, %v310_v59, %v326_v2  ;;  %v321_v7 = vsel %vm317_vm6, %v301_v1, %v304_v57  ;;  %v323_v8 = vsel %vm319_vm8, %v307_v58, %v322_v62 }
 0x217   :  { %v331_v5 = vsel %vm319_vm8, %v313_v60, %v330_v3  ;;  %v328_v9 = vsel %vm318_vm9, %v325_v63, %v327_v4  ;;  %v324_v15 = vsel %vm318_vm9, %v321_v7, %v323_v8 }
 0x218   :  { %v332_v10 = vsel %vm318_vm9, %v329_v0, %v331_v5  ;;  %v704_v13 = vmul.u32.u64.low %v333_v6, %v328_v9  ;;  %v705_v14 = vmul.u32.u64.high %v333_v6, %v328_v9, %v704_v13  ;;  %v340_v17 = vmul.u32 %v333_v6, %v324_v15 }
 0x219   :  { %v701_v11 = vmul.u32.u64.low %v333_v6, %v332_v10  ;;  %v702_v12 = vmul.u32.u64.high %v333_v6, %v332_v10, %v701_v11 }
 0x21a   :  { %v343_v16 = vadd.s32 1, %v705_v14 }
 0x21b   :  { %vm342_vm10 = vc.u32 %v702_v12, %v704_v13  ;;  %v341_v30 = vadd.s32 %v704_v13, %v702_v12 }
 0x21c   :  { %v344_v18 = vsel %vm342_vm10, %v343_v16, %v705_v14 }
 0x21d   :  { %v345_v19 = vadd.s32 %v344_v18, %v340_v17 }
 0x21f   :  { %v346_v20 = vadd.s32 536870912, %v345_v19 }
 0x221   :  { %v347_v21 = vshrl.u32 %v346_v20, 30 }
 0x223   :  { %v348_v22 = vshll.u32 %v347_v21, 30  ;;  %v371_v43 = vsub.s32 4, %v347_v21 }
 0x225   :  { %v349_v23 = vsub.s32 %v345_v19, %v348_v22  ;;  %v372_v46 = vsel %vm287_vm12, %v371_v43, %v347_v21 }
 0x226   :  { %v374_v48 = vsel %vm286_vm13, 0, %v372_v46 }
 0x227   :  { %v351_v24 = vsub.s32 0, %v349_v23  ;;  %v378_v49 = vadd.s32 3, %v374_v48 }
 0x229   :  { %v426_v25 = vmin.u32 %v351_v24, %v349_v23  ;;  %v379_v50 = vand.u32 3, %v378_v49 }
 0x22b   :  { %v353_v27 = vclz %v426_v25  ;;  %vm384_vm14 = vcmp.eq.s32.totalorder %v379_v50, 2  ;;  %vm381_vm15 = vcmp.eq.s32.totalorder %v379_v50, 0  ;;  %vm380_vm0 = vcmp.lt.s32.totalorder %v379_v50, 2 }
 0x22d   :  { %v427_v28 = vadd.s32 4294967294, %v353_v27 }
 0x22f   :  { %vm428_vm11 = vcmp.lt.s32.totalorder %v427_v28, 0 }
 0x230   :  { %v356_v29 = vsel %vm428_vm11, 0, %v427_v28 }
 0x231   :  { %v357_v31 = vsub.s32 32, %v356_v29  ;;  %v361_v32 = vsub.s32 4294967266, %v356_v29  ;;  %v358_v33 = vshll.u32 %v349_v23, %v356_v29 }
 0x233   :  { %v359_v35 = vshrl.u32 %v341_v30, %v357_v31  ;;  %v362_v36 = vadd.s32 127, %v361_v32 }
 0x235   :  { %v360_v37 = vor.u32 %v359_v35, %v358_v33  ;;  %v363_v38 = vshll.u32 %v362_v36, 23 }
 0x237   :  { %v364_v39 = vor.u32 4788187, %v363_v38  ;;  %v367_v41 = vcvt.s32.f32 %v360_v37 }
 0x239   :  { %v365_v40 = vand.u32 2147483647, %v364_v39 }
 0x23b   :  { %v368_v42 = vmul.f32 %v367_v41, %v365_v40 }
 0x23d   :  { %v369_v44 = vxor.u32 2147483648, %v368_v42 }
 0x23f   :  { %v370_v45 = vsel %vm287_vm12, %v369_v44, %v368_v42 }
 0x240   :  { %v373_v47 = vsel %vm286_vm13, %v695_v26, %v370_v45 }
 0x241   :  { %521 = vcosq.f32 %v373_v47 }
 0x242   :  { %523 = vsinq.f32 %v373_v47 }
 0x24b   :  { %v522_v51 = vpop.eup %521 }
 0x24c   :  { %v524_v52 = vpop.eup %523  ;;  %v385_v53 = vxor.u32 2147483648, %v522_v51 }
 0x24d   :  { %v382_v54 = vxor.u32 2147483648, %v524_v52 }
 0x24e   :  { %v386_v55 = vsel %vm384_vm14, %v385_v53, %v524_v52 }
 0x24f   :  { %v383_v34 = vsel %vm381_vm15, %v522_v51, %v382_v54 }
 0x250   :  { %v387_v56 = vsel %vm380_vm0, %v383_v34, %v386_v55 }
 0x251   :  { %v388_v57 = vsel %vm377_vm1, nan, %v387_v56 }
 0x252   :  { %389 = vst [vmem:[#allocation8] sm:$0xff] %v388_v57 }
 0x253   :  { %602 = shalt.err (!%p599_p0)
}
 0x254   :  { %s603_s25 = scalar_lea.hbm %s731_s3, 128 }
 0x255   :  { %p604_p1 = scmp.ne.s32.totalorder %s731_s3, %s603_s25  ;;  %p607_p2 = scmp.lt.u32.totalorder %s603_s25, %s731_s3 }
 0x257   :  { %p609_p3 = pnand %p607_p2, %p604_p1 }
 0x259   :  { %612 = shalt.err (!%p609_p3)
}
 0x25a   :  { %399 = dma.vmem_to_hbm [thread:$0]  %s397_s21, 128, %s731_s3, [#allocation4]  }
 0x25b   :  { %617 = dma.done.wait [#allocation4], 128  }
 0x25c   :  { %618 = vsyncadd [#allocation4], 4294967168 }
 0x25d   :  { %403 = vsyncpa [#allocation3], 1 }
 0x25e   :  { %404 = vsyncpa [#allocation6], 1 }
 0x25f   :  { %405 = vsyncpa [#allocation4], 1 }

</bundles_post_ra>
